<compile_context>
chip_gen: v6e
topology: v6e:2x2x1
jax: 0.10.0
libtpu: 0.0.40
codegen_flags: <defaults>
</compile_context>

<pallas_src>
import jax
import jax.numpy as jnp
from jax.experimental import pallas as pl
from jax.experimental.pallas import tpu as pltpu

LANES = 128


def _round_up(x, m):
    return (x + m - 1) // m * m


def _linear_kernel(params_ref, x_ref, o_ref):
    # params_ref: SMEM (D_out*D_in + D_out,) f32 -> [W row-major ..., bias ...]
    # x_ref:      VMEM (D_in,  TB_R, 128) f32   (batch dense on sublanes & lanes)
    # o_ref:      VMEM (D_out, TB_R, 128) f32
    d_in = x_ref.shape[0]
    d_out = o_ref.shape[0]
    for j in range(d_out):                      # d_out tiny & static
        acc = params_ref[j * d_in] * x_ref[0]   # init from first product (no zeros+bias)
        for i in range(1, d_in):                # d_in tiny & static
            acc = acc + params_ref[j * d_in + i] * x_ref[i]      # VPU broadcast FMA
        o_ref[j] = acc + params_ref[d_out * d_in + j]            # bias added once


def linear_forward_pallas(x, weight, bias, *, max_block_rows=4096):
    """y = x @ weight.T + bias (PyTorch nn.Linear semantics), via Pallas."""
    B, D_in = x.shape
    D_out = weight.shape[0]

    R = pl.cdiv(B, LANES)          # number of 128-sample rows
    B_up = R * LANES               # <=127-sample pad to the lane boundary only

    # One fused wrapper pass: transpose (+tiny pad) + reshape to (D_in, R, 128).
    x_t = jnp.asarray(x, jnp.float32).T                      # (D_in, B)
    if B_up != B:
        x_t = jnp.pad(x_t, ((0, 0), (0, B_up - B)))
    x3 = x_t.reshape(D_in, R, LANES)

    # Flat SMEM scalar table: [W row-major ..., bias ...].
    params = jnp.concatenate(
        [jnp.asarray(weight, jnp.float32).reshape(-1),
         jnp.asarray(bias, jnp.float32).reshape(-1)]
    )

    # Tile rows: multiple of 8 (sublanes), >=2 grid steps when possible (v7x
    # megacore), capped at max_block_rows (4096 rows = 512K samples/step ->
    # ~12 MiB double-buffered; fits every generation's scoped VMEM incl. v7x).
    if R <= 8:
        tb_r = R                                  # single block == full dim
    else:
        tb_r = min(max_block_rows, _round_up(pl.cdiv(R, 2), 8))
    grid = (pl.cdiv(R, tb_r),)                    # last block masked, no padding

    cost = pl.CostEstimate(
        flops=int(2 * B * D_in * D_out),
        transcendentals=0,
        bytes_accessed=int(4 * (B_up * D_in + B_up * D_out + params.size)),
    )

    out3 = pl.pallas_call(
        _linear_kernel,
        out_shape=jax.ShapeDtypeStruct((D_out, R, LANES), jnp.float32),
        grid_spec=pltpu.PrefetchScalarGridSpec(
            num_scalar_prefetch=0,
            grid=grid,
            in_specs=[
                pl.BlockSpec(memory_space=pltpu.MemorySpace.SMEM),       # params (single copy)
                pl.BlockSpec((D_in, tb_r, LANES), lambda i: (0, i, 0)),  # x tile
            ],
            out_specs=pl.BlockSpec((D_out, tb_r, LANES), lambda i: (0, i, 0)),
        ),
        compiler_params=pltpu.CompilerParams(
            dimension_semantics=("parallel",),     # shard grid over both TCs on v7x
            vmem_limit_bytes=32 * 1024 * 1024,
        ),
        cost_estimate=cost,
    )(params, x3)

    out2 = out3.reshape(D_out, B_up)               # free: contiguous reshape
    if B_up != B:
        out2 = out2[:, :B]                         # <=127 cols; negligible
    return out2.T                                  # (B, D_out)


def linear_forward(x, weight, bias, *, min_pallas_batch=65536):
    """Dispatch: small batches use plain XLA (kernel launch overhead dominates)."""
    if x.shape[0] < min_pallas_batch:
        return x @ jnp.asarray(weight, jnp.float32).T + jnp.asarray(bias, jnp.float32)
    return linear_forward_pallas(x, weight, bias)


if __name__ == "__main__":
    input_dim, output_dim = 2, 1

    key = jax.random.PRNGKey(0)
    kx, kw, kb = jax.random.split(key, 3)

    # PyTorch-style U(-1/sqrt(fan_in), 1/sqrt(fan_in)) init.
    bound = 1.0 / (input_dim ** 0.5)
    weight = jax.random.uniform(kw, (output_dim, input_dim), jnp.float32,
                                minval=-bound, maxval=bound)
    bias = jax.random.uniform(kb, (output_dim,), jnp.float32,
                              minval=-bound, maxval=bound)

    # Exact-f32 elementwise reference (no MXU precision ambiguity).
    def ref(xv):
        return (xv[:, None, :] * weight[None, :, :]).sum(-1) + bias[None, :]

    # Case 1: batch multiple of 128 -> no pad/slice, 2-step grid (v7x megacore path).
    batch = 2048
    x = jax.random.normal(kx, (batch, input_dim), jnp.float32)
    y = jax.block_until_ready(linear_forward_pallas(x, weight, bias))
    assert y.shape == (batch, output_dim)
    assert jnp.allclose(y, ref(x), atol=1e-5, rtol=1e-5)

    # Case 2: batch not a multiple of 128 -> lane-boundary pad + masked last block.
    x2 = jax.random.normal(kx, (1000, input_dim), jnp.float32)
    y2 = jax.block_until_ready(linear_forward_pallas(x2, weight, bias))
    assert y2.shape == (1000, output_dim)
    assert jnp.allclose(y2, ref(x2), atol=1e-5, rtol=1e-5)

    # Case 3: dispatch wrapper (tiny batch -> plain XLA path).
    x3 = jax.random.normal(kx, (8, input_dim), jnp.float32)
    y3 = jax.block_until_ready(linear_forward(x3, weight, bias))
    assert jnp.allclose(y3, ref(x3), atol=1e-5, rtol=1e-5)

    print("KERNEL_OK")
</pallas_src>

<mosaic_0001>
module attributes {stable_mosaic.version = 11 : i64} {
  func.func @_linear_kernel(%arg0: i32, %arg1: memref<3xf32, #tpu.memory_space<smem>>, %arg2: memref<2x8x128xf32, #tpu.memory_space<vmem>>, %arg3: memref<1x8x128xf32, #tpu.memory_space<vmem>>) attributes {dimension_semantics = [#tpu.dimension_semantics<parallel>], iteration_bounds = array<i64: 2>, scalar_prefetch = 0 : i64, scratch_operands = 0 : i64, tpu.core_type = #tpu.core_type<tc>, window_params = [{transform_indices = @transform_0, window_bounds = array<i64: 3>}, {transform_indices = @transform_1, window_bounds = array<i64: 2, 8, 128>}, {transform_indices = @transform_2, window_bounds = array<i64: 1, 8, 128>}]} {
    %c0 = arith.constant 0 : index
    %0 = memref.load %arg1[%c0] : memref<3xf32, #tpu.memory_space<smem>>
    %c0_0 = arith.constant 0 : index
    %c0_1 = arith.constant 0 : index
    %c0_2 = arith.constant 0 : index
    %1 = vector.load %arg2[%c0_0, %c0_1, %c0_2] : memref<2x8x128xf32, #tpu.memory_space<vmem>>, vector<1x8x128xf32>
    %2 = vector.shape_cast %1 : vector<1x8x128xf32> to vector<8x128xf32>
    %3 = vector.broadcast %0 : f32 to vector<8x128xf32>
    %4 = arith.mulf %3, %2 : vector<8x128xf32>
    %c1 = arith.constant 1 : index
    %5 = memref.load %arg1[%c1] : memref<3xf32, #tpu.memory_space<smem>>
    %c1_3 = arith.constant 1 : index
    %c0_4 = arith.constant 0 : index
    %c0_5 = arith.constant 0 : index
    %6 = vector.load %arg2[%c1_3, %c0_4, %c0_5] : memref<2x8x128xf32, #tpu.memory_space<vmem>>, vector<1x8x128xf32>
    %7 = vector.shape_cast %6 : vector<1x8x128xf32> to vector<8x128xf32>
    %8 = vector.broadcast %5 : f32 to vector<8x128xf32>
    %9 = arith.mulf %8, %7 : vector<8x128xf32>
    %10 = arith.addf %4, %9 : vector<8x128xf32>
    %c2 = arith.constant 2 : index
    %11 = memref.load %arg1[%c2] : memref<3xf32, #tpu.memory_space<smem>>
    %12 = vector.broadcast %11 : f32 to vector<8x128xf32>
    %13 = arith.addf %10, %12 : vector<8x128xf32>
    %c0_6 = arith.constant 0 : index
    %c0_7 = arith.constant 0 : index
    %c0_8 = arith.constant 0 : index
    %14 = vector.load %arg3[%c0_6, %c0_7, %c0_8] : memref<1x8x128xf32, #tpu.memory_space<vmem>>, vector<1x8x128xf32>
    %15 = vector.shape_cast %14 : vector<1x8x128xf32> to vector<8x128xf32>
    %16 = vector.shape_cast %13 : vector<8x128xf32> to vector<1x8x128xf32>
    tpu.vector_store %arg3[%c0_6, %c0_7, %c0_8], %16 {strides = array<i32>} : memref<1x8x128xf32, #tpu.memory_space<vmem>>, vector<1x8x128xf32>,
    return
  }
  func.func @transform_0(%arg0: i32) -> i32 {
    %c0_i32 = arith.constant 0 : i32
    %c0_i32_0 = arith.constant 0 : i32
    return %c0_i32 : i32
  }
  func.func @transform_1(%arg0: i32) -> (i32, i32, i32) {
    %c0_i32 = arith.constant 0 : i32
    %c0_i32_0 = arith.constant 0 : i32
    %c0_i32_1 = arith.constant 0 : i32
    return %c0_i32, %arg0, %c0_i32_0 : i32, i32, i32
  }
  func.func @transform_2(%arg0: i32) -> (i32, i32, i32) {
    %c0_i32 = arith.constant 0 : i32
    %c0_i32_0 = arith.constant 0 : i32
    %c0_i32_1 = arith.constant 0 : i32
    return %c0_i32, %arg0, %c0_i32_0 : i32, i32, i32
  }
}

</mosaic_0001>

<bundles_post_ra>
// kernel: tpu_custom_call.1
= control target key start
LH: loop header
LB: loop body
LE: loop exit
PB: predicated region body
PF: predicated region fallthrough
CT: control target
= control target key end

     0   :  { %7 = vsyncpa [#allocation5], 0  ;;  %s656_s0 = inlined_call_operand.hbm [shape: f32[3], index: 0, kind: input, shape index: {}]   ;;  %s657_s1 = inlined_call_operand.hbm [shape: f32[2,16,128], index: 1, kind: input, shape index: {}]   ;;  %s658_s2 = inlined_call_operand.hbm [shape: f32[1,16,128], index: 2, kind: output, shape index: {}]  }
   0x1   :  { %8 = vsyncpa [#allocation3], 0 }
   0x2   :  { %10 = vsyncpa [#allocation3 + $0x1], 0 }
   0x3   :  { %11 = vsyncpa [#allocation4], 0 }
   0x4   :  { %13 = vsyncpa [#allocation4 + $0x1], 0  ;;  %s490_s9 = smov 0   ;;  %s492_s10 = smov 0  }
   0x5   :  { %s494_s11 = smov 0   ;;  %s496_s12 = smov 0  }
   0x6 LB: > { %s511_s13 = sadd.s32 4294967295, %s467_s12   ;;  %s283_s14 = sadd.s32 4294967294, %s467_s12   ;;  %s467_s12 = sphi %s496_s12, %s680_s12   ;;  %s463_s11 = sphi %s494_s11, %s679_s11   ;;  %s459_s10 = sphi %s492_s10, %s678_s10   ;;  %s455_s9 = sphi %s490_s9, %s677_s9  }
   0x7   : > { %s515_s15 = sadd.s32 1, %s467_s12   ;;  %s47_s16 = sadd.s32 1, %s463_s11 }
   0x8   : > { %s44_s17 = ssub.s32 %s467_s12, %s515_s15  ;;  %p54_p0 = scmp.ne.s32.totalorder %s463_s11, %s459_s10 }
   0x9   : > { %p45_p1 = scmp.eq.s32.totalorder %s44_s17, 0  ;;  %p55_p2 = scmp.eq.s32.totalorder %s467_s12, 0 }
   0xa   : > { %p60_p3 = scmp.ne.s32.totalorder %s459_s10, %s455_s9  ;;  %p659_p4 = scmp.eq.s32.totalorder %s511_s13, 0 }
   0xb   : > { %s527_s18 = scalar_select %p45_p1, %s463_s11, %s47_s16  }
   0xc   : > { %p529_p5 = por %p55_p2, %p54_p0  ;;  %p535_p6 = por %p659_p4, %p60_p3 }
   0xd   : > { %p84_p7 = scmp.eq.s32.totalorder %s511_s13, 1  ;;  %p90_p8 = scmp.eq.s32.totalorder %s283_s14, 1 }
   0xe   : > { %s664_s20 = scalar_select %p535_p6, 1, 0 }
   0xf   : > { %p284_p9 = scmp.ge.s32.totalorder %s467_s12, 1  ;;  %p97_p10 = scmp.lt.s32.totalorder %s467_s12, 3 }
  0x10   : > { %p542_p11 = por %p84_p7, %p54_p0  ;;  %p546_p12 = por %p90_p8, %p60_p3 }
  0x11   : > { %p550_p13 = pnand %p284_p9, %p97_p10  ;;  %p321_p4 = scmp.lt.s32.totalorder %s467_s12, 2 }
  0x12   : > { %s665_s21 = scalar_select %p542_p11, 1, 0 }
  0x13   : > { %s666_s22 = scalar_select %p546_p12, 1, 0 }
  0x14   : > { %s667_s23 = scalar_select %p550_p13, 1, 0 }
  0x15   : > { %p308_p2 = pneg %p550_p13  ;;  %s119_s24 = sand.u32 1, %s463_s11  }
  0x16   : > { %s288_s25 = sshll.u32 %s467_s12, 7  ;;  %p668_p6 = scmp.eq.s32.totalorder %s511_s13, 0 }
  0x17   : > { %p564_p7 = pnand %p321_p4, %p529_p5  ;;  %s287_s27 = sshll.u32 %s119_s24, 4 }
  0x18   : > { %p309_p0 = pnand %p308_p2, %p668_p6  ;;  %s469_s28 = smov [#allocation2]  }
  0x19   : > { %s574_s5 = scalar_lea.hbm %s657_s1, %s288_s25  ;;  %s123_s6 = scalar_lea.vmem [#allocation6], %s287_s27 }
  0x1a   : > { %311 = dma.hbm_to_smem (!%p309_p0), %s656_s0, 16, %s469_s28, [#allocation5]  }
  0x1b   : > { %s129_s7 = sshll.u32 %s123_s6, 4  ;;  %s578_s8 = scalar_lea.sflag [#allocation3], %s119_s24  ;;  %s576_s7 = int_to_ptr.vmem [resolvable:$true] %s129_s7 }
  0x1c   : > { %s371_s14 = scalar_lea.hbm %s574_s5, 256  ;;  %p373_p4 = pneg %p564_p7 }
  0x1d   : > { %p372_p3 = scmp.ne.s32.totalorder %s574_s5, %s371_s14  ;;  %s376_s19 = scalar_lea.hbm %s657_s1, 512 }
  0x1e   : > { %p377_p8 = scmp.lt.s32.totalorder %s574_s5, %s657_s1  ;;  %p378_p9 = scmp.lt.s32.totalorder %s376_s19, %s371_s14 }
  0x1f   : > { %p374_p5 = pnand %p373_p4, %p372_p3 }
  0x20   : > { %p379_p10 = por %p378_p9, %p377_p8 }
  0x21   : > { %p375_p6 = pneg %p374_p5 }
  0x23   : > { %p380_p2 = pnand %p379_p10, %p375_p6 }
  0x25   : > { %383 = shalt.err (!%p380_p2)
}
  0x26   : > { %s384_s24 = scalar_lea.vmem %s576_s7, 256  ;;  %s470_s27 = smov [#allocation6]  }
  0x27   : > { %p385_p0 = scmp.ne.s32.totalorder %s576_s7, %s384_s24  ;;  %s389_s29 = sshll.u32 %s470_s27, 4  ;;  %s390_s29 = int_to_ptr.vmem [resolvable:$false] %s389_s29 }
  0x28   : > { %s391_s30 = scalar_lea.vmem %s390_s29, 512  ;;  %p392_p5 = scmp.lt.s32.totalorder %s576_s7, %s390_s29 }
  0x29   : > { %p387_p1 = pnand %p385_p0, %p373_p4  ;;  %p393_p12 = scmp.lt.s32.totalorder %s391_s30, %s384_s24 }
  0x2b   : > { %p388_p3 = pneg %p387_p1  ;;  %p394_p11 = por %p393_p12, %p392_p5 }
  0x2d   : > { %p395_p13 = pnand %p394_p11, %p388_p3 }
  0x2f   : > { %398 = shalt.err (!%p395_p13)
}
  0x30   : > { %s471_s3 = smov 256   ;;  %s472_s4 = smov 128  }
  0x31   : > { %s473_s6 = smov 8   ;;  %p670_p1 = scmp.ne.s32.totalorder %s667_s23, 0 }
  0x32   : > { %315 = dma.hbm_to_vmem [thread:$0]  (!%p564_p7), %s574_s5, 256, %s576_s7, %s578_s8, %s471_s3, %s472_s4, %s473_s6  }
  0x33   : > { %141 = sbr.rel (%p670_p1) target bundleno = 90 (0x5a), region = 28  ;;  %p671_p4 = scmp.eq.s32.totalorder (!%p670_p1), %s511_s13, 0 }
  0x38   : > { %442 = dma.done.wait (%p671_p4), [#allocation5], 16   ;;  %p672_p6 = pmov %p671_p4 }
  0x39   : > { %s606_s14 = sand.u32 1, %s459_s10   ;;  %p673_p11 = scmp.ne.s32.totalorder %s664_s20, 0 }
  0x3a   : > { %444 = vsyncadd (%p672_p6), [#allocation5], 4294967280  ;;  %s291_s16 = sshll.u32 %s606_s14, 4  ;;  %s148_s17 = scalar_lea.sflag [#allocation3], %s606_s14 }
  0x3b   : > { %s151_s19 = scalar_lea.vmem [#allocation6], %s291_s16 }
  0x3c   : > { %446 = dma.done.wait (%p673_p11), %s148_s17, 256  }
  0x3d   : > { %448 = vsyncadd (%p673_p11), %s148_s17, 4294967040 }
  0x3e   : > { %156 = sfence }
  0x3f   : > { %s173_s23 = sld [smem:[#allocation2]]  ;;  %s292_s5 = sshll.u32 %s606_s14, 3  ;;  %v174_v0 = vld [vmem:[%s151_s19] sm:$0xff]  ;;  %v294_v1 = vld [vmem:[%s151_s19 + $0x8] sm:$0xff] }
  0x40   : > { %s293_s26 = sld [smem:[#allocation2 + $0x1]]  ;;  %s172_s8 = scalar_lea.vmem [#allocation7], %s292_s5 }
  0x41   : > { %s295_s7 = sld [smem:[#allocation2 + $0x2]]  ;;  %s201_s25 = sshll.u32 %s172_s8, 4  ;;  %s616_s25 = int_to_ptr.vmem [resolvable:$true] %s201_s25 }
  0x42   : > { %s297_s20 = sshll.u32 %s511_s13, 7  ;;  %s188_s29 = scalar_lea.sflag [#allocation4], %s606_s14 }
  0x43   : > { %s199_s27 = scalar_lea.hbm %s658_s2, %s297_s20  ;;  %s399_s30 = scalar_lea.vmem %s616_s25, 128 }
  0x44   : > { %p400_p12 = scmp.ne.s32.totalorder %s616_s25, %s399_s30  ;;  %p674_p13 = scmp.ne.s32.totalorder %s665_s21, 0 }
  0x45   : > { %v175_v2 = vstv %s173_s23  ;;  %s474_s3 = smov [#allocation7]  }
  0x46   : > { %v176_v3 = vmul.f32 %v175_v2, %v174_v0  ;;  %v180_v4 = vstv %s293_s26  ;;  %p401_p7 = pnand %p400_p12, %p674_p13  ;;  %s403_s13 = sshll.u32 %s474_s3, 4  ;;  %s404_s13 = int_to_ptr.vmem [resolvable:$false] %s403_s13 }
  0x47   : > { %v181_v5 = vmul.f32 %v294_v1, %v180_v4  ;;  %v184_v6 = vstv %s295_s7  ;;  %s405_s4 = scalar_lea.vmem %s404_s13, 256  ;;  %p406_p9 = scmp.lt.s32.totalorder %s616_s25, %s404_s13 }
  0x48   : > { %p402_p8 = pneg %p401_p7  ;;  %p407_p10 = scmp.lt.s32.totalorder %s405_s4, %s399_s30 }
  0x49   : > { %v182_v7 = vadd.f32 %v181_v5, %v176_v3 }
  0x4a   : > { %p408_p2 = por %p407_p10, %p406_p9 }
  0x4b   : > { %v185_v8 = vadd.f32 %v184_v6, %v182_v7 }
  0x4c   : > { %p409_p0 = pnand %p408_p2, %p402_p8 }
  0x4d   : > { %186 = vst [vmem:[%s172_s8] sm:$0xff] %v185_v8 }
  0x4e   : > { %412 = shalt.err (!%p409_p0)
}
  0x4f   : > { %s413_s6 = scalar_lea.hbm %s199_s27, 128  ;;  %s417_s17 = scalar_lea.hbm %s658_s2, 256 }
  0x50   : > { %p414_p3 = scmp.ne.s32.totalorder %s199_s27, %s413_s6  ;;  %p418_p4 = scmp.lt.s32.totalorder %s199_s27, %s658_s2 }
  0x51   : > { %p419_p6 = scmp.lt.s32.totalorder %s417_s17, %s413_s6 }
  0x52   : > { %p415_p5 = pnand %p414_p3, %p674_p13 }
  0x53   : > { %p420_p11 = por %p419_p6, %p418_p4 }
  0x54   : > { %p416_p1 = pneg %p415_p5 }
  0x56   : > { %p421_p12 = pnand %p420_p11, %p416_p1 }
  0x58   : > { %424 = shalt.err (!%p421_p12)
}
  0x59   : > { %306 = dma.vmem_to_hbm [thread:$0]  (%p674_p13), %s616_s25, 128, %s199_s27, %s188_s29  }
  0x5a PF: > { %s213_s26 = sand.u32 1, %s455_s9   ;;  %p675_p7 = scmp.ne.s32.totalorder %s666_s22, 0 }
  0x5b   : > { %p676_p8 = scmp.ge.s32.totalorder %s467_s12, 2  ;;  %s214_s5 = scalar_lea.sflag [#allocation4], %s213_s26 }
  0x5d   : > { %p317_p9 = pnand %p676_p8, %p675_p7 }
  0x5f   : > { %p318_p10 = pneg %p317_p9 }
  0x61   : > { %450 = dma.done.wait (%p318_p10), %s214_s5, 128  }
  0x62   : > { %452 = vsyncadd (%p318_p10), %s214_s5, 4294967168  ;;  %p16_p2 = scmp.ge.s32.totalorder %s515_s15, 4   ;;  %s677_s9 = smov %s459_s10 }
  0x63   : > { %s678_s10 = smov %s463_s11  ;;  %s679_s11 = smov %s527_s18 }
  0x64   : > { %s680_s12 = smov %s515_s15  ;;  %18 = sbr.rel (!%p16_p2) target bundleno = 6 (0x6), region = 79 }
  0x69   :  { %219 = vsyncpa [#allocation3], 1 }
  0x6a   :  { %221 = vsyncpa [#allocation3 + $0x1], 1 }
  0x6b   :  { %222 = vsyncpa [#allocation4], 1 }
  0x6c   :  { %224 = vsyncpa [#allocation4 + $0x1], 1 }
  0x6d   :  { %225 = vsyncpa [#allocation5], 1 }
  0x6e   :  { %227 = vsyncpa [#allocation5 + $0x1], 1 }

</bundles_post_ra>
